<compile_context>
chip_gen: v7x
topology: tpu7x:2x2x1
jax: 0.10.0
libtpu: 0.0.40
codegen_flags: <defaults>
</compile_context>

<pallas_src>
import jax
import jax.numpy as jnp
from jax.experimental import pallas as pl
from jax.experimental.pallas import tpu as pltpu

_EPS = 1e-5  # nn.BatchNorm2d default eps


# ------------------------- weight preparation (host/JAX) ----------------------

def _banded_block_diag(w_oihw, W, B):
    """Conv weight (Cout, Cin, 3, 3) -> (3, B*W*Cin, B*W*Cout) banded block-diagonal.

    wb[kh][b*W*Cin + wi*Cin + ci, b*W*Cout + wo*Cout + co] = w[co, ci, kh, kw]
    with wi = wo + kw - 1 (out-of-range wi rows stay zero -> width padding folded in),
    block-diagonal over the B images that share the lane dimension.  With this matrix
        y[h, :] = sum_kh pad[h + kh, :] @ wb[kh]
    reproduces a stride-1, pad-1 3x3 convolution directly in the (H, B*W*C) layout.
    """
    Cout, Cin, KH, KW = w_oihw.shape
    k = jnp.transpose(w_oihw, (2, 3, 1, 0)).astype(jnp.float32)   # (KH, KW, Cin, Cout)
    wb = jnp.zeros((KH, W * Cin, W * Cout), jnp.float32)
    for kw in range(KW):
        for wo in range(W):
            wi = wo + kw - 1
            if 0 <= wi < W:
                wb = wb.at[:, wi * Cin:(wi + 1) * Cin,
                           wo * Cout:(wo + 1) * Cout].set(k[:, kw])
    bd = jnp.zeros((KH, B * W * Cin, B * W * Cout), jnp.float32)
    for b in range(B):
        bd = bd.at[:, b * W * Cin:(b + 1) * W * Cin,
                   b * W * Cout:(b + 1) * W * Cout].set(wb)
    return bd.astype(jnp.bfloat16)                                # bf16 MXU operands


# --------------------------------- forward ------------------------------------

def residual_block_forward(x_nchw, params):
    orig_dtype = x_nchw.dtype
    x = x_nchw.astype(jnp.float32)
    B, C, H, W = x.shape
    L = B * W * C                  # lane-dense activation width (=128 in the test)
    n = B * H * W                  # per-channel reduction size for BN stats
    inv_n = 1.0 / float(n)

    # NCHW -> (H, B*W*C): images side-by-side in lanes, channels minor.
    x2 = jnp.transpose(x, (2, 0, 3, 1)).reshape(H, L)

    def bcast(v):                  # (C,) -> (1, B*W*C) matching the (b, w, c) lane order
        return jnp.tile(v.astype(jnp.float32), B * W).reshape(1, L)

    g1, b1 = bcast(params['g1']), bcast(params['b1'])
    g2, b2 = bcast(params['g2']), bcast(params['b2'])
    w1 = _banded_block_diag(params['w1'], W, B)
    w2 = _banded_block_diag(params['w2'], W, B)

    # Channel selector: (v @ gsum)[:, l'] = sum over lanes l with l % C == l' % C,
    # i.e. grouped per-channel lane reduction + broadcast, performed on the MXU.
    lane = jnp.arange(L, dtype=jnp.int32)
    gsum = (lane[:, None] % C == lane[None, :] % C).astype(jnp.float32)

    def kernel(x_ref, g1_ref, b1_ref, g2_ref, b2_ref, w1_ref, w2_ref, gs_ref,
               o_ref, pad_ref):
        # Zero only the two border rows of the padded scratch (the interior is always
        # fully overwritten); single grid step, so this runs exactly once.
        zrow = jnp.zeros((1, L), jnp.float32)
        pad_ref[0:1, :] = zrow
        pad_ref[H + 1:H + 2, :] = zrow
        gs = gs_ref[...]

        def bn_relu_conv(v, gamma, beta, w_ref):
            # Training-mode BatchNorm (biased variance), two-pass in f32.
            mean = jnp.sum(jnp.dot(v, gs, preferred_element_type=jnp.float32),
                           axis=0, keepdims=True) * inv_n
            d = v - mean
            var = jnp.sum(jnp.dot(d * d, gs, preferred_element_type=jnp.float32),
                          axis=0, keepdims=True) * inv_n
            h = jnp.maximum(d * (gamma * jax.lax.rsqrt(var + _EPS)) + beta, 0.0)
            # Conv3x3: height padding via the scratch border rows, width padding folded
            # into the banded weights -> 3 bf16 MXU matmuls with f32 accumulation.
            pad_ref[1:H + 1, :] = h
            acc = jnp.dot(pad_ref[0:H, :].astype(jnp.bfloat16), w_ref[0],
                          preferred_element_type=jnp.float32)
            acc = acc + jnp.dot(h.astype(jnp.bfloat16), w_ref[1],
                                preferred_element_type=jnp.float32)
            acc = acc + jnp.dot(pad_ref[2:H + 2, :].astype(jnp.bfloat16), w_ref[2],
                                preferred_element_type=jnp.float32)
            return acc                                   # (H, L) f32

        xv = x_ref[...]
        y1 = bn_relu_conv(xv, g1_ref[...], b1_ref[...], w1_ref)
        y2 = bn_relu_conv(y1, g2_ref[...], b2_ref[...], w2_ref)
        o_ref[...] = y2 + xv                             # residual add, f32

    act_spec = pl.BlockSpec((H, L), lambda i: (0, 0))
    vec_spec = pl.BlockSpec((1, L), lambda i: (0, 0))
    w_spec = pl.BlockSpec((3, L, L), lambda i: (0, 0, 0))
    mat_spec = pl.BlockSpec((L, L), lambda i: (0, 0))

    conv_flops = 2 * 3 * 2 * H * L * L                   # 2 stages x 3 taps
    stat_flops = 2 * 2 * 2 * H * L * L                   # 2 stages x 2 stat matmuls
    bytes_accessed = (4 * 2 * H * L          # x in + out
                      + 2 * 2 * 3 * L * L    # bf16 banded weights
                      + 4 * L * L            # gsum
                      + 4 * 4 * L)           # gamma/beta vectors

    out2 = pl.pallas_call(
        kernel,
        grid=(1,),
        in_specs=[act_spec, vec_spec, vec_spec, vec_spec, vec_spec,
                  w_spec, w_spec, mat_spec],
        out_specs=act_spec,
        out_shape=jax.ShapeDtypeStruct((H, L), jnp.float32),
        scratch_shapes=[pltpu.VMEM((H + 2, L), jnp.float32)],
        compiler_params=pltpu.CompilerParams(
            dimension_semantics=("arbitrary",),          # single step; nothing to shard
            vmem_limit_bytes=16 * 1024 * 1024),          # working set is ~0.3 MiB
        cost_estimate=pl.CostEstimate(
            flops=conv_flops + stat_flops, transcendentals=2 * L,
            bytes_accessed=bytes_accessed),
    )(x2, g1, b1, g2, b2, w1, w2, gsum)

    out = jnp.transpose(out2.reshape(H, B, W, C), (1, 3, 0, 2))   # -> NCHW
    return out.astype(orig_dtype)


# ---------------------------- pure-JAX reference -------------------------------

def _reference_nchw(x, params):
    def bn_relu_conv(h, gamma, beta, w):
        mean = jnp.mean(h, axis=(0, 2, 3), keepdims=True)
        var = jnp.mean((h - mean) ** 2, axis=(0, 2, 3), keepdims=True)
        hn = (h - mean) / jnp.sqrt(var + _EPS)
        hn = jnp.maximum(hn * gamma.reshape(1, -1, 1, 1)
                         + beta.reshape(1, -1, 1, 1), 0.0)
        return jax.lax.conv_general_dilated(
            hn, w, window_strides=(1, 1), padding=((1, 1), (1, 1)),
            dimension_numbers=('NCHW', 'OIHW', 'NCHW'),
            precision=jax.lax.Precision.HIGHEST)

    out = bn_relu_conv(x, params['g1'], params['b1'], params['w1'])
    out = bn_relu_conv(out, params['g2'], params['b2'], params['w2'])
    return out + x


# ----------------------------------- main ---------------------------------------

if __name__ == "__main__":
    B, C, H, W = 2, 4, 16, 16
    key = jax.random.PRNGKey(0)
    kx, kw1, kw2, kg1, kb1, kg2, kb2 = jax.random.split(key, 7)

    fan_in = C * 3 * 3
    params = {
        'w1': jax.random.normal(kw1, (C, C, 3, 3), jnp.float32) / jnp.sqrt(fan_in),
        'w2': jax.random.normal(kw2, (C, C, 3, 3), jnp.float32) / jnp.sqrt(fan_in),
        'g1': 1.0 + 0.1 * jax.random.normal(kg1, (C,), jnp.float32),
        'b1': 0.1 * jax.random.normal(kb1, (C,), jnp.float32),
        'g2': 1.0 + 0.1 * jax.random.normal(kg2, (C,), jnp.float32),
        'b2': 0.1 * jax.random.normal(kb2, (C,), jnp.float32),
    }
    x = jax.random.normal(kx, (B, C, H, W), jnp.float32)

    fwd = jax.jit(residual_block_forward)
    out = jax.block_until_ready(fwd(x, params))
    ref = jax.block_until_ready(_reference_nchw(x, params))

    assert out.shape == x.shape and out.dtype == x.dtype
    err = float(jnp.max(jnp.abs(out - ref)))
    # bf16 MXU conv operands dominate the error budget (~1e-2 worst-case at this size).
    if err > 3e-2:
        raise AssertionError(f"kernel/reference mismatch: max abs err = {err}")

    print("KERNEL_OK")
</pallas_src>

<mosaic_0001>
module attributes {stable_mosaic.version = 11 : i64} {
  func.func @kernel(%arg0: i32, %arg1: memref<16x128xf32, #tpu.memory_space<vmem>>, %arg2: memref<1x128xf32, #tpu.memory_space<vmem>>, %arg3: memref<1x128xf32, #tpu.memory_space<vmem>>, %arg4: memref<1x128xf32, #tpu.memory_space<vmem>>, %arg5: memref<1x128xf32, #tpu.memory_space<vmem>>, %arg6: memref<3x128x128xbf16, #tpu.memory_space<vmem>>, %arg7: memref<3x128x128xbf16, #tpu.memory_space<vmem>>, %arg8: memref<128x128xf32, #tpu.memory_space<vmem>>, %arg9: memref<16x128xf32, #tpu.memory_space<vmem>>, %arg10: memref<18x128xf32, #tpu.memory_space<vmem>>) attributes {dimension_semantics = [#tpu.dimension_semantics<arbitrary>], iteration_bounds = array<i64: 1>, scalar_prefetch = 0 : i64, scratch_operands = 1 : i64, tpu.core_type = #tpu.core_type<tc>, window_params = [{pipeline_mode = #tpu.pipeline_mode<synchronous>, transform_indices = @transform_0, window_bounds = array<i64: 16, 128>}, {pipeline_mode = #tpu.pipeline_mode<synchronous>, transform_indices = @transform_1, window_bounds = array<i64: 1, 128>}, {pipeline_mode = #tpu.pipeline_mode<synchronous>, transform_indices = @transform_2, window_bounds = array<i64: 1, 128>}, {pipeline_mode = #tpu.pipeline_mode<synchronous>, transform_indices = @transform_3, window_bounds = array<i64: 1, 128>}, {pipeline_mode = #tpu.pipeline_mode<synchronous>, transform_indices = @transform_4, window_bounds = array<i64: 1, 128>}, {pipeline_mode = #tpu.pipeline_mode<synchronous>, transform_indices = @transform_5, window_bounds = array<i64: 3, 128, 128>}, {pipeline_mode = #tpu.pipeline_mode<synchronous>, transform_indices = @transform_6, window_bounds = array<i64: 3, 128, 128>}, {pipeline_mode = #tpu.pipeline_mode<synchronous>, transform_indices = @transform_7, window_bounds = array<i64: 128, 128>}, {pipeline_mode = #tpu.pipeline_mode<synchronous>, transform_indices = @transform_8, window_bounds = array<i64: 16, 128>}]} {
    %cst = arith.constant 0.000000e+00 : f32
    %0 = vector.broadcast %cst : f32 to vector<1x128xf32>
    %c0 = arith.constant 0 : index
    %c0_0 = arith.constant 0 : index
    %1 = vector.load %arg10[%c0, %c0_0] : memref<18x128xf32, #tpu.memory_space<vmem>>, vector<1x128xf32>
    tpu.vector_store %arg10[%c0, %c0_0], %0 {strides = array<i32>} : memref<18x128xf32, #tpu.memory_space<vmem>>, vector<1x128xf32>,
    %c17 = arith.constant 17 : index
    %c0_1 = arith.constant 0 : index
    %2 = vector.load %arg10[%c17, %c0_1] : memref<18x128xf32, #tpu.memory_space<vmem>>, vector<1x128xf32>
    tpu.vector_store %arg10[%c17, %c0_1], %0 {strides = array<i32>} : memref<18x128xf32, #tpu.memory_space<vmem>>, vector<1x128xf32>,
    %c0_2 = arith.constant 0 : index
    %c0_3 = arith.constant 0 : index
    %3 = vector.load %arg8[%c0_2, %c0_3] : memref<128x128xf32, #tpu.memory_space<vmem>>, vector<128x128xf32>
    %c0_4 = arith.constant 0 : index
    %c0_5 = arith.constant 0 : index
    %4 = vector.load %arg1[%c0_4, %c0_5] : memref<16x128xf32, #tpu.memory_space<vmem>>, vector<16x128xf32>
    %c0_6 = arith.constant 0 : index
    %c0_7 = arith.constant 0 : index
    %5 = vector.load %arg2[%c0_6, %c0_7] : memref<1x128xf32, #tpu.memory_space<vmem>>, vector<1x128xf32>
    %c0_8 = arith.constant 0 : index
    %c0_9 = arith.constant 0 : index
    %6 = vector.load %arg3[%c0_8, %c0_9] : memref<1x128xf32, #tpu.memory_space<vmem>>, vector<1x128xf32>
    %cst_10 = arith.constant dense<0.000000e+00> : vector<16x128xf32>
    %7 = tpu.matmul %4, %3, %cst_10 {dimension_numbers = #tpu.dot_dimension_numbers<[1], [0], [0], [1], [0, 0, 1, 1], [], []>} : vector<16x128xf32>, vector<128x128xf32>, vector<16x128xf32> -> vector<16x128xf32>
    %cst_11 = arith.constant dense<0.000000e+00> : vector<128xf32>
    %8 = vector.multi_reduction <add>, %7, %cst_11 [0] : vector<16x128xf32> to vector<128xf32>
    %9 = vector.shape_cast %8 : vector<128xf32> to vector<1x128xf32>
    %cst_12 = arith.constant 0.001953125 : f32
    %10 = vector.broadcast %cst_12 : f32 to vector<1x128xf32>
    %11 = arith.mulf %9, %10 : vector<1x128xf32>
    %12 = vector.broadcast %11 : vector<1x128xf32> to vector<16x128xf32>
    %13 = arith.subf %4, %12 : vector<16x128xf32>
    %14 = arith.mulf %13, %13 : vector<16x128xf32>
    %cst_13 = arith.constant dense<0.000000e+00> : vector<16x128xf32>
    %15 = tpu.matmul %14, %3, %cst_13 {dimension_numbers = #tpu.dot_dimension_numbers<[1], [0], [0], [1], [0, 0, 1, 1], [], []>} : vector<16x128xf32>, vector<128x128xf32>, vector<16x128xf32> -> vector<16x128xf32>
    %cst_14 = arith.constant dense<0.000000e+00> : vector<128xf32>
    %16 = vector.multi_reduction <add>, %15, %cst_14 [0] : vector<16x128xf32> to vector<128xf32>
    %17 = vector.shape_cast %16 : vector<128xf32> to vector<1x128xf32>
    %cst_15 = arith.constant 0.001953125 : f32
    %18 = vector.broadcast %cst_15 : f32 to vector<1x128xf32>
    %19 = arith.mulf %17, %18 : vector<1x128xf32>
    %cst_16 = arith.constant 9.99999974E-6 : f32
    %20 = vector.broadcast %cst_16 : f32 to vector<1x128xf32>
    %21 = arith.addf %19, %20 : vector<1x128xf32>
    %22 = math.rsqrt %21 : vector<1x128xf32>
    %23 = arith.mulf %5, %22 : vector<1x128xf32>
    %24 = vector.broadcast %23 : vector<1x128xf32> to vector<16x128xf32>
    %25 = arith.mulf %13, %24 : vector<16x128xf32>
    %26 = vector.broadcast %6 : vector<1x128xf32> to vector<16x128xf32>
    %27 = arith.addf %25, %26 : vector<16x128xf32>
    %cst_17 = arith.constant 0.000000e+00 : f32
    %28 = vector.broadcast %cst_17 : f32 to vector<16x128xf32>
    %29 = arith.maximumf %27, %28 : vector<16x128xf32>
    %c1 = arith.constant 1 : index
    %c0_18 = arith.constant 0 : index
    %30 = vector.load %arg10[%c1, %c0_18] : memref<18x128xf32, #tpu.memory_space<vmem>>, vector<16x128xf32>
    tpu.vector_store %arg10[%c1, %c0_18], %29 {strides = array<i32>} : memref<18x128xf32, #tpu.memory_space<vmem>>, vector<16x128xf32>,
    %c0_19 = arith.constant 0 : index
    %c0_20 = arith.constant 0 : index
    %31 = vector.load %arg10[%c0_19, %c0_20] : memref<18x128xf32, #tpu.memory_space<vmem>>, vector<16x128xf32>
    %32 = arith.truncf %31 : vector<16x128xf32> to vector<16x128xbf16>
    %c0_21 = arith.constant 0 : index
    %c0_22 = arith.constant 0 : index
    %c0_23 = arith.constant 0 : index
    %33 = vector.load %arg6[%c0_21, %c0_22, %c0_23] : memref<3x128x128xbf16, #tpu.memory_space<vmem>>, vector<1x128x128xbf16>
    %34 = vector.shape_cast %33 : vector<1x128x128xbf16> to vector<128x128xbf16>
    %cst_24 = arith.constant dense<0.000000e+00> : vector<16x128xf32>
    %35 = tpu.matmul %32, %34, %cst_24 {dimension_numbers = #tpu.dot_dimension_numbers<[1], [0], [0], [1], [0, 0, 1, 1], [], []>} : vector<16x128xbf16>, vector<128x128xbf16>, vector<16x128xf32> -> vector<16x128xf32>
    %36 = arith.truncf %29 : vector<16x128xf32> to vector<16x128xbf16>
    %c1_25 = arith.constant 1 : index
    %c0_26 = arith.constant 0 : index
    %c0_27 = arith.constant 0 : index
    %37 = vector.load %arg6[%c1_25, %c0_26, %c0_27] : memref<3x128x128xbf16, #tpu.memory_space<vmem>>, vector<1x128x128xbf16>
    %38 = vector.shape_cast %37 : vector<1x128x128xbf16> to vector<128x128xbf16>
    %cst_28 = arith.constant dense<0.000000e+00> : vector<16x128xf32>
    %39 = tpu.matmul %36, %38, %cst_28 {dimension_numbers = #tpu.dot_dimension_numbers<[1], [0], [0], [1], [0, 0, 1, 1], [], []>} : vector<16x128xbf16>, vector<128x128xbf16>, vector<16x128xf32> -> vector<16x128xf32>
    %40 = arith.addf %35, %39 : vector<16x128xf32>
    %c2 = arith.constant 2 : index
    %c0_29 = arith.constant 0 : index
    %41 = vector.load %arg10[%c2, %c0_29] : memref<18x128xf32, #tpu.memory_space<vmem>>, vector<16x128xf32>
    %42 = arith.truncf %41 : vector<16x128xf32> to vector<16x128xbf16>
    %c2_30 = arith.constant 2 : index
    %c0_31 = arith.constant 0 : index
    %c0_32 = arith.constant 0 : index
    %43 = vector.load %arg6[%c2_30, %c0_31, %c0_32] : memref<3x128x128xbf16, #tpu.memory_space<vmem>>, vector<1x128x128xbf16>
    %44 = vector.shape_cast %43 : vector<1x128x128xbf16> to vector<128x128xbf16>
    %cst_33 = arith.constant dense<0.000000e+00> : vector<16x128xf32>
    %45 = tpu.matmul %42, %44, %cst_33 {dimension_numbers = #tpu.dot_dimension_numbers<[1], [0], [0], [1], [0, 0, 1, 1], [], []>} : vector<16x128xbf16>, vector<128x128xbf16>, vector<16x128xf32> -> vector<16x128xf32>
    %46 = arith.addf %40, %45 : vector<16x128xf32>
    %c0_34 = arith.constant 0 : index
    %c0_35 = arith.constant 0 : index
    %47 = vector.load %arg4[%c0_34, %c0_35] : memref<1x128xf32, #tpu.memory_space<vmem>>, vector<1x128xf32>
    %c0_36 = arith.constant 0 : index
    %c0_37 = arith.constant 0 : index
    %48 = vector.load %arg5[%c0_36, %c0_37] : memref<1x128xf32, #tpu.memory_space<vmem>>, vector<1x128xf32>
    %cst_38 = arith.constant dense<0.000000e+00> : vector<16x128xf32>
    %49 = tpu.matmul %46, %3, %cst_38 {dimension_numbers = #tpu.dot_dimension_numbers<[1], [0], [0], [1], [0, 0, 1, 1], [], []>} : vector<16x128xf32>, vector<128x128xf32>, vector<16x128xf32> -> vector<16x128xf32>
    %cst_39 = arith.constant dense<0.000000e+00> : vector<128xf32>
    %50 = vector.multi_reduction <add>, %49, %cst_39 [0] : vector<16x128xf32> to vector<128xf32>
    %51 = vector.shape_cast %50 : vector<128xf32> to vector<1x128xf32>
    %cst_40 = arith.constant 0.001953125 : f32
    %52 = vector.broadcast %cst_40 : f32 to vector<1x128xf32>
    %53 = arith.mulf %51, %52 : vector<1x128xf32>
    %54 = vector.broadcast %53 : vector<1x128xf32> to vector<16x128xf32>
    %55 = arith.subf %46, %54 : vector<16x128xf32>
    %56 = arith.mulf %55, %55 : vector<16x128xf32>
    %cst_41 = arith.constant dense<0.000000e+00> : vector<16x128xf32>
    %57 = tpu.matmul %56, %3, %cst_41 {dimension_numbers = #tpu.dot_dimension_numbers<[1], [0], [0], [1], [0, 0, 1, 1], [], []>} : vector<16x128xf32>, vector<128x128xf32>, vector<16x128xf32> -> vector<16x128xf32>
    %cst_42 = arith.constant dense<0.000000e+00> : vector<128xf32>
    %58 = vector.multi_reduction <add>, %57, %cst_42 [0] : vector<16x128xf32> to vector<128xf32>
    %59 = vector.shape_cast %58 : vector<128xf32> to vector<1x128xf32>
    %cst_43 = arith.constant 0.001953125 : f32
    %60 = vector.broadcast %cst_43 : f32 to vector<1x128xf32>
    %61 = arith.mulf %59, %60 : vector<1x128xf32>
    %cst_44 = arith.constant 9.99999974E-6 : f32
    %62 = vector.broadcast %cst_44 : f32 to vector<1x128xf32>
    %63 = arith.addf %61, %62 : vector<1x128xf32>
    %64 = math.rsqrt %63 : vector<1x128xf32>
    %65 = arith.mulf %47, %64 : vector<1x128xf32>
    %66 = vector.broadcast %65 : vector<1x128xf32> to vector<16x128xf32>
    %67 = arith.mulf %55, %66 : vector<16x128xf32>
    %68 = vector.broadcast %48 : vector<1x128xf32> to vector<16x128xf32>
    %69 = arith.addf %67, %68 : vector<16x128xf32>
    %cst_45 = arith.constant 0.000000e+00 : f32
    %70 = vector.broadcast %cst_45 : f32 to vector<16x128xf32>
    %71 = arith.maximumf %69, %70 : vector<16x128xf32>
    %c1_46 = arith.constant 1 : index
    %c0_47 = arith.constant 0 : index
    %72 = vector.load %arg10[%c1_46, %c0_47] : memref<18x128xf32, #tpu.memory_space<vmem>>, vector<16x128xf32>
    tpu.vector_store %arg10[%c1_46, %c0_47], %71 {strides = array<i32>} : memref<18x128xf32, #tpu.memory_space<vmem>>, vector<16x128xf32>,
    %c0_48 = arith.constant 0 : index
    %c0_49 = arith.constant 0 : index
    %73 = vector.load %arg10[%c0_48, %c0_49] : memref<18x128xf32, #tpu.memory_space<vmem>>, vector<16x128xf32>
    %74 = arith.truncf %73 : vector<16x128xf32> to vector<16x128xbf16>
    %c0_50 = arith.constant 0 : index
    %c0_51 = arith.constant 0 : index
    %c0_52 = arith.constant 0 : index
    %75 = vector.load %arg7[%c0_50, %c0_51, %c0_52] : memref<3x128x128xbf16, #tpu.memory_space<vmem>>, vector<1x128x128xbf16>
    %76 = vector.shape_cast %75 : vector<1x128x128xbf16> to vector<128x128xbf16>
    %cst_53 = arith.constant dense<0.000000e+00> : vector<16x128xf32>
    %77 = tpu.matmul %74, %76, %cst_53 {dimension_numbers = #tpu.dot_dimension_numbers<[1], [0], [0], [1], [0, 0, 1, 1], [], []>} : vector<16x128xbf16>, vector<128x128xbf16>, vector<16x128xf32> -> vector<16x128xf32>
    %78 = arith.truncf %71 : vector<16x128xf32> to vector<16x128xbf16>
    %c1_54 = arith.constant 1 : index
    %c0_55 = arith.constant 0 : index
    %c0_56 = arith.constant 0 : index
    %79 = vector.load %arg7[%c1_54, %c0_55, %c0_56] : memref<3x128x128xbf16, #tpu.memory_space<vmem>>, vector<1x128x128xbf16>
    %80 = vector.shape_cast %79 : vector<1x128x128xbf16> to vector<128x128xbf16>
    %cst_57 = arith.constant dense<0.000000e+00> : vector<16x128xf32>
    %81 = tpu.matmul %78, %80, %cst_57 {dimension_numbers = #tpu.dot_dimension_numbers<[1], [0], [0], [1], [0, 0, 1, 1], [], []>} : vector<16x128xbf16>, vector<128x128xbf16>, vector<16x128xf32> -> vector<16x128xf32>
    %82 = arith.addf %77, %81 : vector<16x128xf32>
    %c2_58 = arith.constant 2 : index
    %c0_59 = arith.constant 0 : index
    %83 = vector.load %arg10[%c2_58, %c0_59] : memref<18x128xf32, #tpu.memory_space<vmem>>, vector<16x128xf32>
    %84 = arith.truncf %83 : vector<16x128xf32> to vector<16x128xbf16>
    %c2_60 = arith.constant 2 : index
    %c0_61 = arith.constant 0 : index
    %c0_62 = arith.constant 0 : index
    %85 = vector.load %arg7[%c2_60, %c0_61, %c0_62] : memref<3x128x128xbf16, #tpu.memory_space<vmem>>, vector<1x128x128xbf16>
    %86 = vector.shape_cast %85 : vector<1x128x128xbf16> to vector<128x128xbf16>
    %cst_63 = arith.constant dense<0.000000e+00> : vector<16x128xf32>
    %87 = tpu.matmul %84, %86, %cst_63 {dimension_numbers = #tpu.dot_dimension_numbers<[1], [0], [0], [1], [0, 0, 1, 1], [], []>} : vector<16x128xbf16>, vector<128x128xbf16>, vector<16x128xf32> -> vector<16x128xf32>
    %88 = arith.addf %82, %87 : vector<16x128xf32>
    %89 = arith.addf %88, %4 : vector<16x128xf32>
    %c0_64 = arith.constant 0 : index
    %c0_65 = arith.constant 0 : index
    %90 = vector.load %arg9[%c0_64, %c0_65] : memref<16x128xf32, #tpu.memory_space<vmem>>, vector<16x128xf32>
    tpu.vector_store %arg9[%c0_64, %c0_65], %89 {strides = array<i32>} : memref<16x128xf32, #tpu.memory_space<vmem>>, vector<16x128xf32>,
    return
  }
  func.func @transform_0(%arg0: i32) -> (i32, i32) {
    %c0_i32 = arith.constant 0 : i32
    %c0_i32_0 = arith.constant 0 : i32
    %c0_i32_1 = arith.constant 0 : i32
    return %c0_i32, %c0_i32_0 : i32, i32
  }
  func.func @transform_1(%arg0: i32) -> (i32, i32) {
    %c0_i32 = arith.constant 0 : i32
    %c0_i32_0 = arith.constant 0 : i32
    %c0_i32_1 = arith.constant 0 : i32
    return %c0_i32, %c0_i32_0 : i32, i32
  }
  func.func @transform_2(%arg0: i32) -> (i32, i32) {
    %c0_i32 = arith.constant 0 : i32
    %c0_i32_0 = arith.constant 0 : i32
    %c0_i32_1 = arith.constant 0 : i32
    return %c0_i32, %c0_i32_0 : i32, i32
  }
  func.func @transform_3(%arg0: i32) -> (i32, i32) {
    %c0_i32 = arith.constant 0 : i32
    %c0_i32_0 = arith.constant 0 : i32
    %c0_i32_1 = arith.constant 0 : i32
    return %c0_i32, %c0_i32_0 : i32, i32
  }
  func.func @transform_4(%arg0: i32) -> (i32, i32) {
    %c0_i32 = arith.constant 0 : i32
    %c0_i32_0 = arith.constant 0 : i32
    %c0_i32_1 = arith.constant 0 : i32
    return %c0_i32, %c0_i32_0 : i32, i32
  }
  func.func @transform_5(%arg0: i32) -> (i32, i32, i32) {
    %c0_i32 = arith.constant 0 : i32
    %c0_i32_0 = arith.constant 0 : i32
    %c0_i32_1 = arith.constant 0 : i32
    %c0_i32_2 = arith.constant 0 : i32
    return %c0_i32, %c0_i32_0, %c0_i32_1 : i32, i32, i32
  }
  func.func @transform_6(%arg0: i32) -> (i32, i32, i32) {
    %c0_i32 = arith.constant 0 : i32
    %c0_i32_0 = arith.constant 0 : i32
    %c0_i32_1 = arith.constant 0 : i32
    %c0_i32_2 = arith.constant 0 : i32
    return %c0_i32, %c0_i32_0, %c0_i32_1 : i32, i32, i32
  }
  func.func @transform_7(%arg0: i32) -> (i32, i32) {
    %c0_i32 = arith.constant 0 : i32
    %c0_i32_0 = arith.constant 0 : i32
    %c0_i32_1 = arith.constant 0 : i32
    return %c0_i32, %c0_i32_0 : i32, i32
  }
  func.func @transform_8(%arg0: i32) -> (i32, i32) {
    %c0_i32 = arith.constant 0 : i32
    %c0_i32_0 = arith.constant 0 : i32
    %c0_i32_1 = arith.constant 0 : i32
    return %c0_i32, %c0_i32_0 : i32, i32
  }
}

</mosaic_0001>

<bundles_post_ra>
// kernel: tile.23
= control target key start
LH: loop header
LB: loop body
LE: loop exit
PB: predicated region body
PF: predicated region fallthrough
CT: control target
= control target key end

     0   :  { %s40_s0 = inlined_call_operand.vmem [shape: f32[4], index: 0, kind: input, shape index: {}]   ;;  %s41_s1 = inlined_call_operand.vmem [shape: f32[32,4], index: 1, kind: output, shape index: {}]  }
   0x1   :  { %v4_v0 = vld [vmem:[%s40_s0] ss:$0 sm:$0xff] }
   0x2   :  { %5 = vst [vmem:[%s41_s1] sm:$0xff] %v4_v0  ;;  %12 = vst [vmem:[%s41_s1 + $0x8] sm:$0xff] %v4_v0 }
   0x3   :  { %13 = vst [vmem:[%s41_s1 + $0x10] sm:$0xff] %v4_v0  ;;  %14 = vst [vmem:[%s41_s1 + $0x18] sm:$0xff] %v4_v0 }

// kernel: tile.24
= control target key start
LH: loop header
LB: loop body
LE: loop exit
PB: predicated region body
PF: predicated region fallthrough
CT: control target
= control target key end

     0   :  { %s259_s10 = smov 124   ;;  %s260_s11 = smov 116   ;;  %vm3_vm0 = vcmask 31744   ;;  %vm9_vm1 = vcmask 1048544   ;;  %vm15_vm2 = vcmask 1015744   ;;  %vm21_vm3 = vcmask 982944   ;;  %s399_s0 = inlined_call_operand.vmem [shape: f32[32,4], index: 0, kind: input, shape index: {}]   ;;  %s400_s1 = inlined_call_operand.vmem [shape: f32[1,128], index: 1, kind: output, shape index: {}]  }
   0x1   :  { %v197_v0 = vld [vmem:[%s399_s0 + $0x1f] sm:$0x1]   ;;  %v199_v1 = vld [vmem:[%s399_s0 + $0x1d] sm:$0x1]   ;;  %v198_v2 = vld [vmem:[%s399_s0 + $0x1e] sm:$0x1]  }
   0x2   :  { %7 = vrot.lane.b32.xlu0 %v197_v0, %s259_s10  ;;  %19 = vrot.lane.b32.xlu1 %v199_v1, %s260_s11  ;;  %v200_v3 = vld [vmem:[%s399_s0 + $0x1c] sm:$0x1]   ;;  %s261_s16 = smov 120   ;;  %s262_s17 = smov 112   ;;  %v201_v4 = vld [vmem:[%s399_s0 + $0x1b] sm:$0x1]  }
   0x3   :  { %v202_v5 = vld [vmem:[%s399_s0 + $0x1a] sm:$0x1]   ;;  %s263_s22 = smov 108   ;;  %s264_s23 = smov 104   ;;  %v203_v6 = vld [vmem:[%s399_s0 + $0x19] sm:$0x1]  }
   0x4   :  { %v204_v7 = vld [vmem:[%s399_s0 + $0x18] sm:$0x1]   ;;  %s265_s28 = smov 100   ;;  %s266_s29 = smov 96   ;;  %v205_v8 = vld [vmem:[%s399_s0 + $0x17] sm:$0x1]  }
   0x5   :  { %v206_v9 = vld [vmem:[%s399_s0 + $0x16] sm:$0x1]   ;;  %v2_v10 = vld [vmem:[%s399_s0] sm:$0x1]   ;;  %s267_s7 = smov 92   ;;  %s268_s8 = smov 88  }
   0x6   :  { %13 = vrot.lane.b32.xlu0 %v198_v2, %s261_s16  ;;  %25 = vrot.lane.b32.xlu1 %v200_v3, %s262_s17  ;;  %4 = vst.msk [vmem:[#allocation0] sm:$0x1] %vm3_vm0, %v2_v10   ;;  %v207_v11 = vld [vmem:[%s399_s0 + $0x15] sm:$0x1]   ;;  %v208_v12 = vld [vmem:[%s399_s0 + $0x14] sm:$0x1]  }
   0x7   :  { %s269_s13 = smov 84   ;;  %s270_s14 = smov 80   ;;  %v209_v13 = vld [vmem:[%s399_s0 + $0x13] sm:$0x1]   ;;  %v210_v14 = vld [vmem:[%s399_s0 + $0x12] sm:$0x1]  }
   0x8   :  { %s271_s19 = smov 76   ;;  %s272_s20 = smov 72   ;;  %v211_v15 = vld [vmem:[%s399_s0 + $0x11] sm:$0x1]   ;;  %v212_v16 = vld [vmem:[%s399_s0 + $0x10] sm:$0x1]  }
   0x9   :  { %s273_s25 = smov 68   ;;  %s274_s26 = smov 64   ;;  %v213_v17 = vld [vmem:[%s399_s0 + $0xf] sm:$0x1]   ;;  %v214_v18 = vld [vmem:[%s399_s0 + $0xe] sm:$0x1]  }
   0xa   :  { %31 = vrot.lane.b32.xlu0 %v201_v4, %s263_s22  ;;  %37 = vrot.lane.b32.xlu1 %v202_v5, %s264_s23  ;;  %s275_s2 = smov 60   ;;  %s276_s3 = smov 56   ;;  %v215_v19 = vld [vmem:[%s399_s0 + $0xd] sm:$0x1]   ;;  %v216_v20 = vld [vmem:[%s399_s0 + $0xc] sm:$0x1]  }
   0xb   :  { %s278_s9 = smov 48   ;;  %v217_v21 = vld [vmem:[%s399_s0 + $0xb] sm:$0x1]   ;;  %v218_v22 = vld [vmem:[%s399_s0 + $0xa] sm:$0x1]   ;;  %s280_s15 = smov 40  }
   0xc   :  { %v219_v23 = vld [vmem:[%s399_s0 + $0x9] sm:$0x1]   ;;  %v220_v24 = vld [vmem:[%s399_s0 + $0x8] sm:$0x1]   ;;  %s282_s21 = smov 32   ;;  %s284_s27 = smov 24  }
   0xd   :  { %v221_v25 = vld [vmem:[%s399_s0 + $0x7] sm:$0x1]   ;;  %v222_v26 = vld [vmem:[%s399_s0 + $0x6] sm:$0x1]   ;;  %v223_v27 = vld [vmem:[%s399_s0 + $0x5] sm:$0x1]  }
   0xe   :  { %43 = vrot.lane.b32.xlu0 %v203_v6, %s265_s28  ;;  %49 = vrot.lane.b32.xlu1 %v204_v7, %s266_s29  ;;  %v224_v28 = vld [vmem:[%s399_s0 + $0x4] sm:$0x1]   ;;  %s286_s4 = smov 16   ;;  %v225_v29 = vld [vmem:[%s399_s0 + $0x3] sm:$0x1]   ;;  %s288_s10 = smov 8  }
   0xf   :  { %v226_v30 = vld [vmem:[%s399_s0 + $0x2] sm:$0x1]   ;;  %v227_v31 = vld [vmem:[%s399_s0 + $0x1] sm:$0x1]   ;;  %s289_s0 = smov 4   ;;  %vm27_vm4 = vcmask 950144  }
  0x10   :  { %vm33_vm5 = vcmask 917344   ;;  %vm39_vm6 = vcmask 884544   ;;  %vm45_vm7 = vcmask 851744   ;;  %vm51_vm8 = vcmask 818944  }
  0x11   :  { %vm57_vm9 = vcmask 786144   ;;  %vm63_vm10 = vcmask 753344   ;;  %vm69_vm11 = vcmask 720544   ;;  %vm75_vm12 = vcmask 687744  }
  0x12   :  { %55 = vrot.lane.b32.xlu0 %v205_v8, %s267_s7  ;;  %61 = vrot.lane.b32.xlu1 %v206_v9, %s268_s8  ;;  %s277_s8 = smov 52   ;;  %vm81_vm13 = vcmask 654944   ;;  %vm87_vm14 = vcmask 622144   ;;  %vm93_vm15 = vcmask 589344   ;;  %vm99_vm0 = vcmask 556544  }
  0x16   :  { %67 = vrot.lane.b32.xlu0 %v207_v11, %s269_s13  ;;  %73 = vrot.lane.b32.xlu1 %v208_v12, %s270_s14  ;;  %s279_s14 = smov 44  }
  0x1a   :  { %79 = vrot.lane.b32.xlu0 %v209_v13, %s271_s19  ;;  %85 = vrot.lane.b32.xlu1 %v210_v14, %s272_s20  ;;  %s281_s20 = smov 36  }
  0x1e   :  { %91 = vrot.lane.b32.xlu0 %v211_v15, %s273_s25  ;;  %97 = vrot.lane.b32.xlu1 %v212_v16, %s274_s26  ;;  %s283_s26 = smov 28  }
  0x22   :  { %103 = vrot.lane.b32.xlu0 %v213_v17, %s275_s2  ;;  %109 = vrot.lane.b32.xlu1 %v214_v18, %s276_s3  ;;  %s285_s3 = smov 20  }
  0x26   :  { %115 = vrot.lane.b32.xlu0 %v215_v19, %s277_s8  ;;  %121 = vrot.lane.b32.xlu1 %v216_v20, %s278_s9  ;;  %s287_s9 = smov 12  }
  0x2a   :  { %127 = vrot.lane.b32.xlu0 %v217_v21, %s279_s14  ;;  %133 = vrot.lane.b32.xlu1 %v218_v22, %s280_s15 }
  0x2e   :  { %139 = vrot.lane.b32.xlu0 %v219_v23, %s281_s20  ;;  %145 = vrot.lane.b32.xlu1 %v220_v24, %s282_s21 }
  0x32   :  { %151 = vrot.lane.b32.xlu0 %v221_v25, %s283_s26  ;;  %157 = vrot.lane.b32.xlu1 %v222_v26, %s284_s27 }
  0x36   :  { %163 = vrot.lane.b32.xlu0 %v223_v27, %s285_s3  ;;  %169 = vrot.lane.b32.xlu1 %v224_v28, %s286_s4 }
  0x3a   :  { %175 = vrot.lane.b32.xlu0 %v225_v29, %s287_s9  ;;  %181 = vrot.lane.b32.xlu1 %v226_v30, %s288_s10 }
  0x3e   :  { %187 = vrot.lane.b32.xlu0 %v227_v31, %s289_s0 }
  0x74   :  { %v8_v32 = vpop.permute.xlu0 %7   ;;  %v20_v33 = vpop.permute.xlu1 %19  }
  0x75   :  { %10 = vst.msk [vmem:[#allocation0] sm:$0x1] %vm9_vm1, %v8_v32   ;;  %vm105_vm1 = vcmask 523744  }
  0x78   :  { %v14_v34 = vpop.permute.xlu0 %13   ;;  %v26_v35 = vpop.permute.xlu1 %25  }
  0x79   :  { %16 = vst.msk [vmem:[#allocation0] sm:$0x1] %vm15_vm2, %v14_v34   ;;  %vm111_vm2 = vcmask 490944  }
  0x7a   :  { %22 = vst.msk [vmem:[#allocation0] sm:$0x1] %vm21_vm3, %v20_v33   ;;  %vm117_vm3 = vcmask 458144  }
  0x7b   :  { %28 = vst.msk [vmem:[#allocation0] sm:$0x1] %vm27_vm4, %v26_v35   ;;  %vm123_vm4 = vcmask 425344  }
  0x7c   :  { %v32_v36 = vpop.permute.xlu0 %31   ;;  %v38_v37 = vpop.permute.xlu1 %37  }
  0x7d   :  { %34 = vst.msk [vmem:[#allocation0] sm:$0x1] %vm33_vm5, %v32_v36   ;;  %vm129_vm5 = vcmask 392544  }
  0x7e   :  { %40 = vst.msk [vmem:[#allocation0] sm:$0x1] %vm39_vm6, %v38_v37   ;;  %vm135_vm6 = vcmask 359744  }
  0x80   :  { %v44_v38 = vpop.permute.xlu0 %43   ;;  %v50_v39 = vpop.permute.xlu1 %49  }
  0x81   :  { %46 = vst.msk [vmem:[#allocation0] sm:$0x1] %vm45_vm7, %v44_v38   ;;  %vm141_vm7 = vcmask 326944  }
  0x82   :  { %52 = vst.msk [vmem:[#allocation0] sm:$0x1] %vm51_vm8, %v50_v39   ;;  %vm147_vm8 = vcmask 294144  }
  0x84   :  { %v56_v40 = vpop.permute.xlu0 %55   ;;  %v62_v41 = vpop.permute.xlu1 %61  }
  0x85   :  { %58 = vst.msk [vmem:[#allocation0] sm:$0x1] %vm57_vm9, %v56_v40   ;;  %vm153_vm9 = vcmask 261344  }
  0x86   :  { %64 = vst.msk [vmem:[#allocation0] sm:$0x1] %vm63_vm10, %v62_v41   ;;  %vm159_vm10 = vcmask 228544  }
  0x88   :  { %v68_v42 = vpop.permute.xlu0 %67   ;;  %v74_v43 = vpop.permute.xlu1 %73  }
  0x89   :  { %70 = vst.msk [vmem:[#allocation0] sm:$0x1] %vm69_vm11, %v68_v42   ;;  %vm165_vm11 = vcmask 195744  }
  0x8a   :  { %76 = vst.msk [vmem:[#allocation0] sm:$0x1] %vm75_vm12, %v74_v43   ;;  %vm171_vm12 = vcmask 162944  }
  0x8c   :  { %v80_v44 = vpop.permute.xlu0 %79   ;;  %v86_v45 = vpop.permute.xlu1 %85  }
  0x8d   :  { %82 = vst.msk [vmem:[#allocation0] sm:$0x1] %vm81_vm13, %v80_v44   ;;  %vm177_vm13 = vcmask 130144  }
  0x8e   :  { %88 = vst.msk [vmem:[#allocation0] sm:$0x1] %vm87_vm14, %v86_v45   ;;  %vm183_vm14 = vcmask 97344  }
  0x90   :  { %v92_v46 = vpop.permute.xlu0 %91   ;;  %v98_v47 = vpop.permute.xlu1 %97  }
  0x91   :  { %94 = vst.msk [vmem:[#allocation0] sm:$0x1] %vm93_vm15, %v92_v46   ;;  %vm189_vm15 = vcmask 64544  }
  0x92   :  { %100 = vst.msk [vmem:[#allocation0] sm:$0x1] %vm99_vm0, %v98_v47  }
  0x94   :  { %v104_v48 = vpop.permute.xlu0 %103   ;;  %v110_v49 = vpop.permute.xlu1 %109  }
  0x95   :  { %106 = vst.msk [vmem:[#allocation0] sm:$0x1] %vm105_vm1, %v104_v48  }
  0x96   :  { %112 = vst.msk [vmem:[#allocation0] sm:$0x1] %vm111_vm2, %v110_v49  }
  0x98   :  { %v116_v50 = vpop.permute.xlu0 %115   ;;  %v122_v51 = vpop.permute.xlu1 %121  }
  0x99   :  { %118 = vst.msk [vmem:[#allocation0] sm:$0x1] %vm117_vm3, %v116_v50  }
  0x9a   :  { %124 = vst.msk [vmem:[#allocation0] sm:$0x1] %vm123_vm4, %v122_v51  }
  0x9c   :  { %v128_v52 = vpop.permute.xlu0 %127   ;;  %v134_v53 = vpop.permute.xlu1 %133  }
  0x9d   :  { %130 = vst.msk [vmem:[#allocation0] sm:$0x1] %vm129_vm5, %v128_v52  }
  0x9e   :  { %136 = vst.msk [vmem:[#allocation0] sm:$0x1] %vm135_vm6, %v134_v53  }
  0xa0   :  { %v140_v54 = vpop.permute.xlu0 %139   ;;  %v146_v55 = vpop.permute.xlu1 %145  }
  0xa1   :  { %142 = vst.msk [vmem:[#allocation0] sm:$0x1] %vm141_vm7, %v140_v54  }
  0xa2   :  { %148 = vst.msk [vmem:[#allocation0] sm:$0x1] %vm147_vm8, %v146_v55  }
  0xa4   :  { %v152_v56 = vpop.permute.xlu0 %151   ;;  %v158_v57 = vpop.permute.xlu1 %157  }
  0xa5   :  { %154 = vst.msk [vmem:[#allocation0] sm:$0x1] %vm153_vm9, %v152_v56  }
  0xa6   :  { %160 = vst.msk [vmem:[#allocation0] sm:$0x1] %vm159_vm10, %v158_v57  }
  0xa8   :  { %v164_v58 = vpop.permute.xlu0 %163   ;;  %v170_v59 = vpop.permute.xlu1 %169  }
  0xa9   :  { %166 = vst.msk [vmem:[#allocation0] sm:$0x1] %vm165_vm11, %v164_v58  }
  0xaa   :  { %172 = vst.msk [vmem:[#allocation0] sm:$0x1] %vm171_vm12, %v170_v59  }
  0xac   :  { %v176_v60 = vpop.permute.xlu0 %175   ;;  %v182_v61 = vpop.permute.xlu1 %181  }
  0xad   :  { %178 = vst.msk [vmem:[#allocation0] sm:$0x1] %vm177_vm13, %v176_v60  }
  0xae   :  { %184 = vst.msk [vmem:[#allocation0] sm:$0x1] %vm183_vm14, %v182_v61  }
  0xb0   :  { %v188_v62 = vpop.permute.xlu0 %187  }
  0xb1   :  { %190 = vst.msk [vmem:[#allocation0] sm:$0x1] %vm189_vm15, %v188_v62  }
  0xb8   :  { %v194_v63 = vld [vmem:[#allocation0] sm:$0x1] }
  0xb9   :  { %196 = vst [vmem:[%s400_s1] sm:$0x1] %v194_v63 }

// kernel: residual_block_forward.1
= control target key start
LH: loop header
LB: loop body
LE: loop exit
PB: predicated region body
PF: predicated region fallthrough
CT: control target
= control target key end

     0   :  { %v1790_v41 = vmov 0.0   ;;  %vm1791_vm0 = vmmov 0   ;;  %v226_v60 = vlaneseq  ;;  %s2232_s7 = inlined_call_operand.vmem [shape: f32[128,128], index: 7, kind: input, shape index: {}]   ;;  %s2233_s0 = inlined_call_operand.vmem [shape: f32[16,128], index: 0, kind: input, shape index: {}]   ;;  %s2234_s5 = inlined_call_operand.vmem [shape: bf16[3,128,128], index: 5, kind: input, shape index: {}]   ;;  %s2235_s1 = inlined_call_operand.vmem [shape: f32[1,128], index: 1, kind: input, shape index: {}]   ;;  %s2236_s2 = inlined_call_operand.vmem [shape: f32[1,128], index: 2, kind: input, shape index: {}]   ;;  %s2237_s6 = inlined_call_operand.vmem [shape: bf16[3,128,128], index: 6, kind: input, shape index: {}]   ;;  %s2238_s3 = inlined_call_operand.vmem [shape: f32[1,128], index: 3, kind: input, shape index: {}]   ;;  %s2239_s4 = inlined_call_operand.vmem [shape: f32[1,128], index: 4, kind: input, shape index: {}]   ;;  %s2240_s8 = inlined_call_operand.vmem [shape: f32[16,128], index: 8, kind: output, shape index: {}]  }
   0x1   :  { %v32_v0 = vld [vmem:[%s2232_s7] sm:$0xff]  ;;  %v33_v1 = vld [vmem:[%s2232_s7 + $0x8] sm:$0xff]  ;;  %v34_v2 = vld [vmem:[%s2232_s7 + $0x10] sm:$0xff]  ;;  %30 = vst [vmem:[#allocation2] sm:$0x1] %v1790_v41 }
   0x2   :  { %v1846_v3 = vpack.c.bf16 %v33_v1, %v32_v0  ;;  %v35_v4 = vld [vmem:[%s2232_s7 + $0x18] sm:$0xff]  ;;  %v36_v6 = vld [vmem:[%s2232_s7 + $0x20] sm:$0xff]  ;;  %v37_v7 = vld [vmem:[%s2232_s7 + $0x28] sm:$0xff]  ;;  %31 = vst [vmem:[#allocation2 + $0x11] sm:$0x1] %v1790_v41  ;;  %v2009_v61 = vshrl.u32 %v226_v60, 7 }
   0x3   :  { %v1851_v5 = vpack.c.bf16 %v35_v4, %v34_v2  ;;  %v1864_v8 = vpack.c.bf16 %v37_v7, %v36_v6  ;;  %v1869_v9 = vld [vmem:[%s2233_s0] sm:$0xff]  ;;  %v38_v10 = vld [vmem:[%s2232_s7 + $0x30] sm:$0xff]  ;;  %v39_v11 = vld [vmem:[%s2232_s7 + $0x38] sm:$0xff] }
   0x4   :  { %1601 = vmatprep.subr.bf16.mxu0 %v1846_v3  ;;  %1633 = vmatprep.subr.bf16.mxu1 %v1846_v3  ;;  %v1882_v12 = vpack.c.bf16 %v39_v11, %v38_v10  ;;  %v40_v13 = vld [vmem:[%s2232_s7 + $0x40] sm:$0xff]  ;;  %v41_v14 = vld [vmem:[%s2232_s7 + $0x48] sm:$0xff]  ;;  %v42_v16 = vld [vmem:[%s2232_s7 + $0x50] sm:$0xff]  ;;  %v228_v63 = vsub.s32 0, %v2009_v61 }
   0x5   :  { %1603 = vmatpush3.bf16.msra.mxu0 %v1846_v3  ;;  %1635 = vmatpush3.bf16.msra.mxu1 %v1846_v3  ;;  %v1894_v15 = vpack.c.bf16 %v41_v14, %v40_v13  ;;  %v43_v17 = vld [vmem:[%s2232_s7 + $0x58] sm:$0xff]  ;;  %v44_v19 = vld [vmem:[%s2232_s7 + $0x60] sm:$0xff]  ;;  %v45_v20 = vld [vmem:[%s2232_s7 + $0x68] sm:$0xff] }
   0x6   :  { %1605 = vmatprep.subr.bf16.mxu0 %v1851_v5  ;;  %1637 = vmatprep.subr.bf16.mxu1 %v1851_v5  ;;  %v1906_v18 = vpack.c.bf16 %v43_v17, %v42_v16  ;;  %v1918_v21 = vpack.c.bf16 %v45_v20, %v44_v19  ;;  %v46_v22 = vld [vmem:[%s2232_s7 + $0x70] sm:$0xff]  ;;  %v47_v23 = vld [vmem:[%s2232_s7 + $0x78] sm:$0xff]  ;;  %v1941_v25 = vld [vmem:[%s2233_s0 + $0x8] sm:$0xff] }
   0x7   :  { %1372 = vmatprep.mubr.f32.mxu0 %v1869_v9  ;;  %v1930_v24 = vpack.c.bf16 %v47_v23, %v46_v22  ;;  %v1738_v40 = vld [vmem:[%s2234_s5 + $0x40] sm:$0xff]   ;;  %v1739_v42 = vld [vmem:[%s2234_s5 + $0x48] sm:$0xff]   ;;  %v1740_v43 = vld [vmem:[%s2234_s5 + $0x50] sm:$0xff]  }
   0x8   :  { %v1741_v44 = vld [vmem:[%s2234_s5 + $0x58] sm:$0xff]   ;;  %v1742_v45 = vld [vmem:[%s2234_s5 + $0x60] sm:$0xff]   ;;  %v1743_v46 = vld [vmem:[%s2234_s5 + $0x68] sm:$0xff]  }
   0x9   :  { %1607 = vmatpush3.bf16.msra.mxu0 %v1851_v5  ;;  %1639 = vmatpush3.bf16.msra.mxu1 %v1851_v5  ;;  %v1744_v47 = vld [vmem:[%s2234_s5 + $0x70] sm:$0xff]   ;;  %v1745_v48 = vld [vmem:[%s2234_s5 + $0x78] sm:$0xff]   ;;  %v50_v62 = vld [vmem:[%s2235_s1] sm:$0x1] }
   0xa   :  { %1609 = vmatprep.subr.bf16.mxu0 %v1864_v8  ;;  %1641 = vmatprep.subr.bf16.mxu1 %v1864_v8  ;;  %v1100_v4 = vld [vmem:[%s2236_s2] ss:$0 sm:$0xff]  ;;  %v1747_v19 = vld [vmem:[%s2234_s5 + $0x8] sm:$0xff]   ;;  %v1748_v20 = vld [vmem:[%s2234_s5 + $0x10] sm:$0xff]  }
   0xb   :  { %v1746_v16 = vld [vmem:[%s2234_s5] sm:$0xff]   ;;  %v1749_v22 = vld [vmem:[%s2234_s5 + $0x18] sm:$0xff]  }
   0xc   :  { %v1750_v23 = vld [vmem:[%s2234_s5 + $0x20] sm:$0xff]  }
   0xd   :  { %1611 = vmatpush3.bf16.msra.mxu0 %v1864_v8  ;;  %1643 = vmatpush3.bf16.msra.mxu1 %v1864_v8  ;;  %v1768_v60 = vld [vmem:[%s2237_s6 + $0x60] sm:$0xff]  }
   0xe   :  { %1613 = vmatprep.subr.bf16.mxu0 %v1882_v12  ;;  %1645 = vmatprep.subr.bf16.mxu1 %v1882_v12 }
  0x11   :  { %1615 = vmatpush3.bf16.msra.mxu0 %v1882_v12  ;;  %1647 = vmatpush3.bf16.msra.mxu1 %v1882_v12 }
  0x12   :  { %1617 = vmatprep.subr.bf16.mxu0 %v1894_v15  ;;  %1649 = vmatprep.subr.bf16.mxu1 %v1894_v15 }
  0x15   :  { %1619 = vmatpush3.bf16.msra.mxu0 %v1894_v15  ;;  %1651 = vmatpush3.bf16.msra.mxu1 %v1894_v15 }
  0x16   :  { %1621 = vmatprep.subr.bf16.mxu0 %v1906_v18  ;;  %1653 = vmatprep.subr.bf16.mxu1 %v1906_v18 }
  0x19   :  { %1623 = vmatpush3.bf16.msra.mxu0 %v1906_v18  ;;  %1655 = vmatpush3.bf16.msra.mxu1 %v1906_v18 }
  0x1a   :  { %1625 = vmatprep.subr.bf16.mxu0 %v1918_v21  ;;  %1657 = vmatprep.subr.bf16.mxu1 %v1918_v21 }
  0x1d   :  { %1627 = vmatpush3.bf16.msra.mxu0 %v1918_v21  ;;  %1659 = vmatpush3.bf16.msra.mxu1 %v1918_v21 }
  0x1e   :  { %1629 = vmatprep.subr.bf16.mxu0 %v1930_v24  ;;  %1661 = vmatprep.subr.bf16.mxu1 %v1930_v24 }
  0x21   :  { %1631 = vmatpush3.bf16.msra.mxu0 %v1930_v24  ;;  %1663 = vmatpush3.bf16.msra.mxu1 %v1930_v24 }
  0x22   :  { %1665 = vmatprep.subr.bf16.mxu1 %v1846_v3  ;;  %1410 = vmatprep.subr.bf16.mxu0 %v1790_v41 }
  0x24   :  { %1373 = vmatmul.mubr.f32.vlgmr.msra.gmra.mrb[0].mxu0 %v1941_v25 }
  0x25   :  { %1411 = vmatpush3.bf16.msra.mxu0 %v1738_v40  ;;  %1426 = vmatprep.mubr.msk.bf16.mxu0 %vm1791_vm0, %v1790_v41 }
  0x26   :  { %1412 = vmatprep.subr.bf16.mxu0 %v1790_v41 }
  0x29   :  { %1413 = vmatpush3.bf16.msra.mxu0 %v1739_v42 }
  0x2a   :  { %1414 = vmatprep.subr.bf16.mxu0 %v1790_v41 }
  0x2d   :  { %1415 = vmatpush3.bf16.msra.mxu0 %v1740_v43 }
  0x2e   :  { %1416 = vmatprep.subr.bf16.mxu0 %v1790_v41 }
  0x31   :  { %1417 = vmatpush3.bf16.msra.mxu0 %v1741_v44 }
  0x32   :  { %1418 = vmatprep.subr.bf16.mxu0 %v1790_v41 }
  0x35   :  { %1419 = vmatpush3.bf16.msra.mxu0 %v1742_v45 }
  0x36   :  { %1420 = vmatprep.subr.bf16.mxu0 %v1790_v41 }
  0x39   :  { %1421 = vmatpush3.bf16.msra.mxu0 %v1743_v46 }
  0x3a   :  { %1422 = vmatprep.subr.bf16.mxu0 %v1790_v41 }
  0x3d   :  { %1423 = vmatpush3.bf16.msra.mxu0 %v1744_v47 }
  0x3e   :  { %1424 = vmatprep.subr.bf16.mxu0 %v1790_v41 }
  0x41   :  { %1425 = vmatpush3.bf16.msra.mxu0 %v1745_v48 }
  0x42   :  { %1430 = vmatprep.subr.bf16.mxu0 %v1790_v41 }
  0xf7   :  { %v1374_v26 = vpop.f32.mrb[0].mxu0 }
  0xf8   :  { %v118_v27 = vpop.f32.mrb[1].mxu0 }
  0xf9   :  { %v127_v28 = vadd.f32 %v1374_v26, %v118_v27  ;;  %v1751_v26 = vld [vmem:[%s2234_s5 + $0x28] sm:$0xff]   ;;  %v1752_v27 = vld [vmem:[%s2234_s5 + $0x30] sm:$0xff]  }
  0xfb   :  { %v128_v29 = vrot.slane %v127_v28, 4 }
  0xfd   :  { %v129_v30 = vadd.f32 %v128_v29, %v127_v28  ;;  %v1753_v28 = vld [vmem:[%s2234_s5 + $0x38] sm:$0xff]  }
  0xff   :  { %v130_v31 = vrot.slane %v129_v30, 2 }
 0x101   :  { %v131_v32 = vadd.f32 %v130_v31, %v129_v30  ;;  %v1754_v31 = vld [vmem:[%s2234_s5 + $0x80] sm:$0xff]  }
 0x103   :  { %v132_v33 = vrot.slane %v131_v32, 1 }
 0x105   :  { %v133_v34 = vadd.f32 %v132_v33, %v131_v32  ;;  %v1755_v33 = vld [vmem:[%s2234_s5 + $0x88] sm:$0xff]  }
 0x107   :  { %v134_v35 = vmul.f32 0.001953125, %v133_v34  ;;  %v1756_v34 = vld [vmem:[%s2234_s5 + $0x90] sm:$0xff]  }
 0x109   :  { %v1947_v36 = vsub.f32 %v1869_v9, %v134_v35  ;;  %v1950_v37 = vsub.f32 %v1941_v25, %v134_v35  ;;  %v1757_v35 = vld [vmem:[%s2234_s5 + $0x98] sm:$0xff]  }
 0x10b   :  { %v137_v38 = vmul.f32 %v1947_v36, %v1947_v36  ;;  %v138_v39 = vmul.f32 %v1950_v37, %v1950_v37 }
 0x10d   :  { %1407 = vmatprep.mubr.f32.mxu1 %v137_v38  ;;  %v1760_v38 = vld [vmem:[%s2234_s5 + $0xb0] sm:$0xff]  }
 0x10e   :  { %1408 = vmatmul.mubr.f32.vlgmr.msra.gmra.mrb[0].mxu1 %v138_v39  ;;  %v1761_v39 = vld [vmem:[%s2234_s5 + $0xb8] sm:$0xff]  }
 0x10f   :  { %1667 = vmatpush3.bf16.msra.mxu1 %v1846_v3 }
 0x110   :  { %1669 = vmatprep.subr.bf16.mxu1 %v1851_v5 }
 0x113   :  { %1671 = vmatpush3.bf16.msra.mxu1 %v1851_v5 }
 0x114   :  { %1673 = vmatprep.subr.bf16.mxu1 %v1864_v8 }
 0x117   :  { %1675 = vmatpush3.bf16.msra.mxu1 %v1864_v8 }
 0x118   :  { %1677 = vmatprep.subr.bf16.mxu1 %v1882_v12 }
 0x11b   :  { %1679 = vmatpush3.bf16.msra.mxu1 %v1882_v12 }
 0x11c   :  { %1681 = vmatprep.subr.bf16.mxu1 %v1894_v15 }
 0x11f   :  { %1683 = vmatpush3.bf16.msra.mxu1 %v1894_v15 }
 0x120   :  { %1685 = vmatprep.subr.bf16.mxu1 %v1906_v18 }
 0x123   :  { %1687 = vmatpush3.bf16.msra.mxu1 %v1906_v18 }
 0x124   :  { %1689 = vmatprep.subr.bf16.mxu1 %v1918_v21 }
 0x127   :  { %1691 = vmatpush3.bf16.msra.mxu1 %v1918_v21 }
 0x128   :  { %1693 = vmatprep.subr.bf16.mxu1 %v1930_v24 }
 0x12b   :  { %1695 = vmatpush3.bf16.msra.mxu1 %v1930_v24 }
 0x12c   :  { %1697 = vmatprep.subr.bf16.mxu1 %v1846_v3 }
 0x1e1   :  { %v1409_v49 = vpop.f32.mrb[0].mxu1 }
 0x1e2   :  { %v205_v50 = vpop.f32.mrb[1].mxu1 }
 0x1e3   :  { %v214_v51 = vadd.f32 %v1409_v49, %v205_v50 }
 0x1e5   :  { %v215_v52 = vrot.slane %v214_v51, 4 }
 0x1e7   :  { %v216_v53 = vadd.f32 %v215_v52, %v214_v51 }
 0x1e9   :  { %v217_v54 = vrot.slane %v216_v53, 2 }
 0x1eb   :  { %v218_v55 = vadd.f32 %v217_v54, %v216_v53  ;;  %v1762_v54 = vld [vmem:[%s2237_s6 + $0x40] sm:$0xff]  }
 0x1ed   :  { %v219_v56 = vrot.slane %v218_v55, 1 }
 0x1ef   :  { %v220_v57 = vadd.f32 %v219_v56, %v218_v55  ;;  %v1763_v55 = vld [vmem:[%s2237_s6 + $0x48] sm:$0xff]   ;;  %v1764_v56 = vld [vmem:[%s2237_s6 + $0x50] sm:$0xff]  }
 0x1f1   :  { %v221_v58 = vmul.f32 0.001953125, %v220_v57  ;;  %v1765_v57 = vld [vmem:[%s2237_s6] sm:$0xff]  }
 0x1f3   :  { %v222_v59 = vadd.f32 1e-05, %v221_v58  ;;  %v1766_v58 = vld [vmem:[%s2237_s6 + $0x58] sm:$0xff]  }
 0x1f5   :  { %1786 = vrsqrt.f32 %v222_v59  ;;  %v1767_v59 = vld [vmem:[%s2237_s6 + $0x8] sm:$0xff]  }
 0x1ff   :  { %v1787_v0 = vpop.eup %1786 }
 0x200   :  { %v224_v1 = vmul.f32 %v1787_v0, %v50_v62  ;;  %v1769_v62 = vld [vmem:[%s2237_s6 + $0x10] sm:$0xff]   ;;  %v1770_v0 = vld [vmem:[%s2237_s6 + $0x68] sm:$0xff]  }
 0x202   :  { %v229_v2 = vrot.slane %v224_v1, %v228_v63  ;;  %v1771_v1 = vld [vmem:[%s2237_s6 + $0x18] sm:$0xff]  }
 0x204   :  { %v231_v6 = vmul.f32 %v229_v2, %v1947_v36  ;;  %v232_v7 = vmul.f32 %v229_v2, %v1950_v37  ;;  %v1758_v36 = vld [vmem:[%s2234_s5 + $0xa0] sm:$0xff]   ;;  %v1759_v37 = vld [vmem:[%s2234_s5 + $0xa8] sm:$0xff]   ;;  %v1772_v2 = vld [vmem:[%s2237_s6 + $0x70] sm:$0xff]  }
 0x206   :  { %v239_v10 = vadd.f32 %v1100_v4, %v231_v6  ;;  %v240_v11 = vadd.f32 %v1100_v4, %v232_v7  ;;  %v1773_v4 = vld [vmem:[%s2237_s6 + $0x20] sm:$0xff]   ;;  %v1774_v6 = vld [vmem:[%s2237_s6 + $0x78] sm:$0xff]   ;;  %v1775_v7 = vld [vmem:[%s2237_s6 + $0x28] sm:$0xff]  }
 0x208   :  { %v241_v13 = vmax.f32 %v239_v10, 0.0  ;;  %v242_v14 = vmax.f32 %v240_v11, 0.0  ;;  %v1777_v10 = vld [vmem:[%s2237_s6 + $0x30] sm:$0xff]   ;;  %v1779_v11 = vld [vmem:[%s2237_s6 + $0x38] sm:$0xff]  }
 0x20a   :  { %243 = vst [vmem:[#allocation2 + $0x1] sm:$0xff] %v241_v13  ;;  %244 = vst [vmem:[#allocation2 + $0x9] sm:$0xff] %v242_v14  ;;  %v264_v17 = vpack.c.bf16 %v242_v14, %v241_v13 }
 0x20c   :  { %1427 = vmatmul.mubr.bf16.vlgmr.msra.gmra.mrb[4].mxu0 %v264_v17 }
 0x20d   :  { %1431 = vmatpush3.bf16.msra.mxu0 %v1746_v16  ;;  %1446 = vmatprep.mubr.msk.bf16.mxu0 %vm1791_vm0, %v1790_v41 }
 0x20e   :  { %1432 = vmatprep.subr.bf16.mxu0 %v1790_v41 }
 0x211   :  { %1433 = vmatpush3.bf16.msra.mxu0 %v1747_v19  ;;  %v245_v29 = vld [vmem:[#allocation2] sm:$0xff]  ;;  %v246_v30 = vld [vmem:[#allocation2 + $0x8] sm:$0xff] }
 0x212   :  { %1434 = vmatprep.subr.bf16.mxu0 %v1790_v41  ;;  %v247_v32 = vpack.c.bf16 %v246_v30, %v245_v29  ;;  %v460_v40 = vld [vmem:[#allocation2 + $0x2] sm:$0xff]  ;;  %v461_v42 = vld [vmem:[#allocation2 + $0xa] sm:$0xff]  ;;  %v571_v29 = vld [vmem:[%s2238_s3] sm:$0x1] }
 0x213   :  { %v462_v43 = vpack.c.bf16 %v461_v42, %v460_v40  ;;  %v1776_v40 = vld [vmem:[%s2237_s6 + $0x80] sm:$0xff]  }
 0x215   :  { %1435 = vmatpush3.bf16.msra.mxu0 %v1748_v20 }
 0x216   :  { %1436 = vmatprep.subr.bf16.mxu0 %v1790_v41 }
 0x219   :  { %1437 = vmatpush3.bf16.msra.mxu0 %v1749_v22 }
 0x21a   :  { %1438 = vmatprep.subr.bf16.mxu0 %v1790_v41 }
 0x21d   :  { %1439 = vmatpush3.bf16.msra.mxu0 %v1750_v23 }
 0x21e   :  { %1440 = vmatprep.subr.bf16.mxu0 %v1790_v41 }
 0x221   :  { %1441 = vmatpush3.bf16.msra.mxu0 %v1751_v26 }
 0x222   :  { %1442 = vmatprep.subr.bf16.mxu0 %v1790_v41 }
 0x225   :  { %1443 = vmatpush3.bf16.msra.mxu0 %v1752_v27 }
 0x226   :  { %1444 = vmatprep.subr.bf16.mxu0 %v1790_v41 }
 0x229   :  { %1445 = vmatpush3.bf16.msra.mxu0 %v1753_v28 }
 0x22a   :  { %1450 = vmatprep.subr.bf16.mxu0 %v1790_v41 }
 0x22c   :  { %1447 = vmatmul.mubr.bf16.vlgmr.msra.gmra.mrb[4].mxu0 %v247_v32 }
 0x22d   :  { %1451 = vmatpush3.bf16.msra.mxu0 %v1754_v31  ;;  %1466 = vmatprep.mubr.msk.bf16.mxu0 %vm1791_vm0, %v1790_v41 }
 0x22e   :  { %1452 = vmatprep.subr.bf16.mxu0 %v1790_v41 }
 0x231   :  { %1453 = vmatpush3.bf16.msra.mxu0 %v1755_v33  ;;  %v1157_v33 = vld [vmem:[%s2239_s4] ss:$0 sm:$0xff] }
 0x232   :  { %1454 = vmatprep.subr.bf16.mxu0 %v1790_v41 }
 0x235   :  { %1455 = vmatpush3.bf16.msra.mxu0 %v1756_v34 }
 0x236   :  { %1456 = vmatprep.subr.bf16.mxu0 %v1790_v41 }
 0x239   :  { %1457 = vmatpush3.bf16.msra.mxu0 %v1757_v35 }
 0x23a   :  { %1458 = vmatprep.subr.bf16.mxu0 %v1790_v41 }
 0x23d   :  { %1459 = vmatpush3.bf16.msra.mxu0 %v1758_v36 }
 0x23e   :  { %1460 = vmatprep.subr.bf16.mxu0 %v1790_v41 }
 0x241   :  { %1461 = vmatpush3.bf16.msra.mxu0 %v1759_v37 }
 0x242   :  { %1462 = vmatprep.subr.bf16.mxu0 %v1790_v41 }
 0x245   :  { %1463 = vmatpush3.bf16.msra.mxu0 %v1760_v38 }
 0x246   :  { %1464 = vmatprep.subr.bf16.mxu0 %v1790_v41 }
 0x249   :  { %1465 = vmatpush3.bf16.msra.mxu0 %v1761_v39 }
 0x24a   :  { %1560 = vmatprep.subr.bf16.mxu0 %v1790_v41 }
 0x24c   :  { %1467 = vmatmul.mubr.bf16.vlgmr.msra.gmra.mrb[4].mxu0 %v462_v43 }
 0x24d   :  { %1576 = vmatprep.mubr.msk.bf16.mxu0 %vm1791_vm0, %v1790_v41  ;;  %1561 = vmatpush3.bf16.msra.mxu0 %v1765_v57 }
 0x24e   :  { %1562 = vmatprep.subr.bf16.mxu0 %v1790_v41 }
 0x251   :  { %1563 = vmatpush3.bf16.msra.mxu0 %v1767_v59 }
 0x252   :  { %1564 = vmatprep.subr.bf16.mxu0 %v1790_v41 }
 0x255   :  { %1565 = vmatpush3.bf16.msra.mxu0 %v1769_v62 }
 0x256   :  { %1566 = vmatprep.subr.bf16.mxu0 %v1790_v41 }
 0x259   :  { %1567 = vmatpush3.bf16.msra.mxu0 %v1771_v1 }
 0x25a   :  { %1568 = vmatprep.subr.bf16.mxu0 %v1790_v41 }
 0x25d   :  { %1569 = vmatpush3.bf16.msra.mxu0 %v1773_v4 }
 0x25e   :  { %1570 = vmatprep.subr.bf16.mxu0 %v1790_v41 }
 0x261   :  { %1571 = vmatpush3.bf16.msra.mxu0 %v1775_v7 }
 0x262   :  { %1572 = vmatprep.subr.bf16.mxu0 %v1790_v41 }
 0x265   :  { %1573 = vmatpush3.bf16.msra.mxu0 %v1777_v10 }
 0x266   :  { %1574 = vmatprep.subr.bf16.mxu0 %v1790_v41 }
 0x269   :  { %1575 = vmatpush3.bf16.msra.mxu0 %v1779_v11 }
 0x31f   :  { %v562_v44 = vpop.f32.mrb[4].mxu0 }
 0x320   :  { %v1468_v45 = vpop.f32.mrb[5].mxu0  ;;  %1502 = vmatprep.mubr.f32.mxu1 %v562_v44 }
 0x321   :  { %v565_v46 = vpop.f32.mrb[6].mxu0 }
 0x322   :  { %v1469_v47 = vpop.f32.mrb[7].mxu0  ;;  %1503 = vmatmul.mubr.f32.vlgmr.msra.gmra.mrb[2].mxu1 %v565_v46 }
 0x323   :  { %1699 = vmatpush3.bf16.msra.mxu1 %v1846_v3  ;;  %v1782_v47 = vld [vmem:[%s2237_s6 + $0xa0] sm:$0xff]  }
 0x324   :  { %1701 = vmatprep.subr.bf16.mxu1 %v1851_v5 }
 0x327   :  { %1703 = vmatpush3.bf16.msra.mxu1 %v1851_v5 }
 0x328   :  { %1705 = vmatprep.subr.bf16.mxu1 %v1864_v8 }
 0x32b   :  { %1707 = vmatpush3.bf16.msra.mxu1 %v1864_v8 }
 0x32c   :  { %1709 = vmatprep.subr.bf16.mxu1 %v1882_v12 }
 0x32f   :  { %1711 = vmatpush3.bf16.msra.mxu1 %v1882_v12 }
 0x330   :  { %1713 = vmatprep.subr.bf16.mxu1 %v1894_v15 }
 0x333   :  { %1715 = vmatpush3.bf16.msra.mxu1 %v1894_v15 }
 0x334   :  { %1717 = vmatprep.subr.bf16.mxu1 %v1906_v18 }
 0x337   :  { %1719 = vmatpush3.bf16.msra.mxu1 %v1906_v18 }
 0x338   :  { %1721 = vmatprep.subr.bf16.mxu1 %v1918_v21 }
 0x33b   :  { %1723 = vmatpush3.bf16.msra.mxu1 %v1918_v21 }
 0x33c   :  { %1725 = vmatprep.subr.bf16.mxu1 %v1930_v24 }
 0x33f   :  { %1727 = vmatpush3.bf16.msra.mxu1 %v1930_v24 }
 0x340   :  { %1540 = vmatprep.subr.bf16.mxu1 %v1790_v41 }
 0x3f5   :  { %v1504_v3 = vpop.f32.mrb[2].mxu1 }
 0x3f6   :  { %v639_v5 = vpop.f32.mrb[3].mxu1 }
 0x3f7   :  { %v648_v8 = vadd.f32 %v1504_v3, %v639_v5  ;;  %v1783_v3 = vld [vmem:[%s2237_s6 + $0xa8] sm:$0xff]   ;;  %v1784_v5 = vld [vmem:[%s2237_s6 + $0xb0] sm:$0xff]  }
 0x3f9   :  { %v649_v12 = vrot.slane %v648_v8, 4 }
 0x3fb   :  { %v650_v48 = vadd.f32 %v649_v12, %v648_v8  ;;  %v1785_v8 = vld [vmem:[%s2237_s6 + $0xb8] sm:$0xff]  }
 0x3fd   :  { %v651_v15 = vrot.slane %v650_v48, 2 }
 0x3ff   :  { %v652_v49 = vadd.f32 %v651_v15, %v650_v48 }
 0x401   :  { %v653_v50 = vrot.slane %v652_v49, 1 }
 0x403   :  { %v654_v51 = vadd.f32 %v653_v50, %v652_v49 }
 0x405   :  { %v655_v18 = vmul.f32 0.001953125, %v654_v51 }
 0x407   :  { %v2108_v52 = vsub.f32 %v565_v46, %v655_v18  ;;  %v2110_v53 = vsub.f32 %v562_v44, %v655_v18  ;;  %v1780_v44 = vld [vmem:[%s2237_s6 + $0x90] sm:$0xff]   ;;  %v1781_v46 = vld [vmem:[%s2237_s6 + $0x98] sm:$0xff]  }
 0x409   :  { %v658_v21 = vmul.f32 %v2110_v53, %v2110_v53  ;;  %v659_v24 = vmul.f32 %v2108_v52, %v2108_v52 }
 0x40b   :  { %1537 = vmatprep.mubr.f32.mxu1 %v658_v21 }
 0x40c   :  { %1538 = vmatmul.mubr.f32.vlgmr.msra.gmra.mrb[4].mxu1 %v659_v24 }
 0x40d   :  { %1556 = vmatprep.mubr.msk.bf16.mxu1 %vm1791_vm0, %v1790_v41  ;;  %1541 = vmatpush3.bf16.msra.mxu1 %v1762_v54 }
 0x40e   :  { %1542 = vmatprep.subr.bf16.mxu1 %v1790_v41 }
 0x411   :  { %1543 = vmatpush3.bf16.msra.mxu1 %v1763_v55 }
 0x412   :  { %1544 = vmatprep.subr.bf16.mxu1 %v1790_v41 }
 0x415   :  { %1545 = vmatpush3.bf16.msra.mxu1 %v1764_v56 }
 0x416   :  { %1546 = vmatprep.subr.bf16.mxu1 %v1790_v41 }
 0x419   :  { %1547 = vmatpush3.bf16.msra.mxu1 %v1766_v58 }
 0x41a   :  { %1548 = vmatprep.subr.bf16.mxu1 %v1790_v41 }
 0x41d   :  { %1549 = vmatpush3.bf16.msra.mxu1 %v1768_v60 }
 0x41e   :  { %1550 = vmatprep.subr.bf16.mxu1 %v1790_v41 }
 0x421   :  { %1551 = vmatpush3.bf16.msra.mxu1 %v1770_v0 }
 0x422   :  { %1552 = vmatprep.subr.bf16.mxu1 %v1790_v41 }
 0x425   :  { %1553 = vmatpush3.bf16.msra.mxu1 %v1772_v2 }
 0x426   :  { %1554 = vmatprep.subr.bf16.mxu1 %v1790_v41 }
 0x429   :  { %1555 = vmatpush3.bf16.msra.mxu1 %v1774_v6 }
 0x42a   :  { %1580 = vmatprep.subr.bf16.mxu1 %v1790_v41 }
 0x4df   :  { %v1539_v13 = vpop.f32.mrb[4].mxu1 }
 0x4e0   :  { %v726_v14 = vpop.f32.mrb[5].mxu1 }
 0x4e1   :  { %v735_v16 = vadd.f32 %v1539_v13, %v726_v14 }
 0x4e3   :  { %v736_v17 = vrot.slane %v735_v16, 4 }
 0x4e5   :  { %v737_v19 = vadd.f32 %v736_v17, %v735_v16 }
 0x4e7   :  { %v738_v20 = vrot.slane %v737_v19, 2 }
 0x4e9   :  { %v739_v22 = vadd.f32 %v738_v20, %v737_v19 }
 0x4eb   :  { %v740_v23 = vrot.slane %v739_v22, 1 }
 0x4ed   :  { %v741_v26 = vadd.f32 %v740_v23, %v739_v22 }
 0x4ef   :  { %v742_v27 = vmul.f32 0.001953125, %v741_v26 }
 0x4f1   :  { %v743_v28 = vadd.f32 1e-05, %v742_v27 }
 0x4f3   :  { %1788 = vrsqrt.f32 %v743_v28 }
 0x4fd   :  { %v1789_v30 = vpop.eup %1788 }
 0x4fe   :  { %v745_v31 = vmul.f32 %v1789_v30, %v571_v29 }
 0x500   :  { %v750_v32 = vrot.slane %v745_v31, %v228_v63  ;;  %v1778_v63 = vld [vmem:[%s2237_s6 + $0x88] sm:$0xff]  }
 0x502   :  { %v752_v34 = vmul.f32 %v750_v32, %v2110_v53  ;;  %v753_v35 = vmul.f32 %v750_v32, %v2108_v52 }
 0x504   :  { %v760_v36 = vadd.f32 %v1157_v33, %v752_v34  ;;  %v761_v37 = vadd.f32 %v1157_v33, %v753_v35 }
 0x506   :  { %v762_v38 = vmax.f32 %v760_v36, 0.0  ;;  %v763_v39 = vmax.f32 %v761_v37, 0.0 }
 0x508   :  { %764 = vst [vmem:[#allocation2 + $0x1] sm:$0xff] %v762_v38  ;;  %765 = vst [vmem:[#allocation2 + $0x9] sm:$0xff] %v763_v39  ;;  %v785_v61 = vpack.c.bf16 %v763_v39, %v762_v38 }
 0x50a   :  { %1557 = vmatmul.mubr.bf16.vlgmr.msra.gmra.mrb[8].mxu1 %v785_v61 }
 0x50b   :  { %1581 = vmatpush3.bf16.msra.mxu1 %v1776_v40  ;;  %1596 = vmatprep.mubr.msk.bf16.mxu1 %vm1791_vm0, %v1790_v41 }
 0x50c   :  { %1582 = vmatprep.subr.bf16.mxu1 %v1790_v41 }
 0x50f   :  { %1583 = vmatpush3.bf16.msra.mxu1 %v1778_v63  ;;  %v766_v42 = vld [vmem:[#allocation2] sm:$0xff]  ;;  %v767_v43 = vld [vmem:[#allocation2 + $0x8] sm:$0xff] }
 0x510   :  { %1584 = vmatprep.subr.bf16.mxu1 %v1790_v41  ;;  %v768_v45 = vpack.c.bf16 %v767_v43, %v766_v42  ;;  %v981_v12 = vld [vmem:[#allocation2 + $0x2] sm:$0xff]  ;;  %v982_v48 = vld [vmem:[#allocation2 + $0xa] sm:$0xff] }
 0x511   :  { %v983_v15 = vpack.c.bf16 %v982_v48, %v981_v12 }
 0x512   :  { %1577 = vmatmul.mubr.bf16.vlgmr.msra.gmra.mrb[8].mxu0 %v768_v45 }
 0x513   :  { %1585 = vmatpush3.bf16.msra.mxu1 %v1780_v44 }
 0x514   :  { %1586 = vmatprep.subr.bf16.mxu1 %v1790_v41 }
 0x517   :  { %1587 = vmatpush3.bf16.msra.mxu1 %v1781_v46 }
 0x518   :  { %1588 = vmatprep.subr.bf16.mxu1 %v1790_v41 }
 0x51b   :  { %1589 = vmatpush3.bf16.msra.mxu1 %v1782_v47 }
 0x51c   :  { %1590 = vmatprep.subr.bf16.mxu1 %v1790_v41 }
 0x51f   :  { %1591 = vmatpush3.bf16.msra.mxu1 %v1783_v3 }
 0x520   :  { %1592 = vmatprep.subr.bf16.mxu1 %v1790_v41 }
 0x523   :  { %1593 = vmatpush3.bf16.msra.mxu1 %v1784_v5 }
 0x524   :  { %1594 = vmatprep.subr.bf16.mxu1 %v1790_v41 }
 0x527   :  { %1595 = vmatpush3.bf16.msra.mxu1 %v1785_v8 }
 0x52a   :  { %1597 = vmatmul.mubr.bf16.vlgmr.msra.gmra.mrb[12].mxu1 %v983_v15 }
 0x5dd   :  { %v885_v49 = vpop.f32.mrb[8].mxu1 }
 0x5de   :  { %v1558_v50 = vpop.f32.mrb[9].mxu1 }
 0x5df   :  { %v888_v51 = vpop.f32.mrb[10].mxu1 }
 0x5e0   :  { %v1559_v18 = vpop.f32.mrb[11].mxu1 }
 0x5e5   :  { %v974_v52 = vpop.f32.mrb[8].mxu0 }
 0x5e6   :  { %v975_v53 = vadd.f32 %v974_v52, %v885_v49  ;;  %v1578_v21 = vpop.f32.mrb[9].mxu0 }
 0x5e7   :  { %v977_v24 = vpop.f32.mrb[10].mxu0 }
 0x5e8   :  { %v978_v54 = vadd.f32 %v977_v24, %v888_v51  ;;  %v1579_v55 = vpop.f32.mrb[11].mxu0 }
 0x5fd   :  { %v1083_v56 = vpop.f32.mrb[12].mxu1 }
 0x5fe   :  { %v1090_v57 = vadd.f32 %v1083_v56, %v975_v53  ;;  %v1598_v58 = vpop.f32.mrb[13].mxu1 }
 0x5ff   :  { %v1086_v59 = vpop.f32.mrb[14].mxu1 }
 0x600   :  { %v1092_v41 = vadd.f32 %v1090_v57, %v1869_v9  ;;  %v1091_v60 = vadd.f32 %v1086_v59, %v978_v54  ;;  %v1599_v62 = vpop.f32.mrb[15].mxu1 }
 0x602   :  { %1094 = vst [vmem:[%s2240_s8] sm:$0xff] %v1092_v41  ;;  %v1093_v0 = vadd.f32 %v1091_v60, %v1941_v25 }
 0x604   :  { %1095 = vst [vmem:[%s2240_s8 + $0x8] sm:$0xff] %v1093_v0 }

</bundles_post_ra>
